<compile_context>
chip_gen: v7x
topology: tpu7x:2x2x1
jax: 0.10.0
libtpu: 0.0.40
codegen_flags: <defaults>
</compile_context>

<pallas_src>
import functools

import jax
import jax.numpy as jnp
from jax import lax
from jax.experimental import pallas as pl
from jax.experimental.pallas import tpu as pltpu


# -----------------------------------------------------------------------------
# Kernel A: encoder_q(im_q), encoder_k(im_k) (GAP folded into fc), L2-normalize,
# l_pos = (q.k)/T.  Tiny tensors; single invocation, everything VMEM-resident.
# -----------------------------------------------------------------------------
def _moco_encode_kernel(xq_ref, wq_ref, bq_ref, xk_ref, wk_ref, bk_ref,
                        qs_ref, kn_ref, lpos_ref, *, inv_T):
    q = jnp.dot(xq_ref[...], wq_ref[...],
                preferred_element_type=jnp.float32) + bq_ref[...]      # (N, D)
    k = jnp.dot(xk_ref[...], wk_ref[...],
                preferred_element_type=jnp.float32) + bk_ref[...]      # (N, D)

    # L2 normalize along the feature dim (rsqrt -> EUP slot, nearly free).
    qn = q * lax.rsqrt(jnp.maximum(jnp.sum(q * q, axis=1, keepdims=True), 1e-24))
    kn = k * lax.rsqrt(jnp.maximum(jnp.sum(k * k, axis=1, keepdims=True), 1e-24))
    qs = qn * inv_T                                  # pre-scale by 1/T once

    lpos_ref[...] = jnp.sum(qs * kn, axis=1, keepdims=True)   # (N, 1) = l_pos/T
    kn_ref[...] = kn                                          # new keys (f32)
    qs_ref[...] = qs.astype(qs_ref.dtype)                     # bf16 for queue matmul


def moco_encode(x_q, w_pool_q, b_q, x_k, w_pool_k, b_k, *, T):
    n = x_q.shape[0]
    d = w_pool_q.shape[1]
    return pl.pallas_call(
        functools.partial(_moco_encode_kernel, inv_T=1.0 / T),
        out_shape=(
            jax.ShapeDtypeStruct((n, d), jnp.bfloat16),   # qs = q_normalized / T
            jax.ShapeDtypeStruct((n, d), jnp.float32),    # kn = k_normalized
            jax.ShapeDtypeStruct((n, 1), jnp.float32),    # l_pos / T
        ),
    )(x_q, w_pool_q, b_q, x_k, w_pool_k, b_k)


# -----------------------------------------------------------------------------
# Kernel B: l_neg = (q/T) @ queue, queue in native (D, K) bf16 layout,
# K-tiled grid, 'parallel' so the dominant matmul shards across TensorCores.
# -----------------------------------------------------------------------------
def _moco_lneg_kernel(qs_ref, queue_ref, out_ref):
    out_ref[...] = jnp.dot(qs_ref[...], queue_ref[...],
                           preferred_element_type=jnp.float32)


def moco_l_neg(qs_bf16, queue_dk, *, tile_k=None):
    n, d = qs_bf16.shape
    d2, K = queue_dk.shape
    assert d == d2
    if tile_k is None:
        # (D, tile_k) bf16 tile: 128 KB at D=32, tile_k=2048 -> comfortably
        # double-buffered within v7x's 64 MiB / v5e's 16 MiB scoped VMEM.
        tile_k = min(K, 2048)
    assert tile_k % 128 == 0 and K % tile_k == 0
    return pl.pallas_call(
        _moco_lneg_kernel,
        out_shape=jax.ShapeDtypeStruct((n, K), jnp.float32),
        grid=(K // tile_k,),
        in_specs=[
            pl.BlockSpec((n, d), lambda j: (0, 0)),          # qs: fetched once
            pl.BlockSpec((d, tile_k), lambda j: (0, j)),     # queue tile (bf16)
        ],
        out_specs=pl.BlockSpec((n, tile_k), lambda j: (0, j)),   # lane-dense store
        compiler_params=pltpu.CompilerParams(
            dimension_semantics=("parallel",)),
    )(qs_bf16, queue_dk)


# -----------------------------------------------------------------------------
# MoCo forward (method='moco') — functional version
# -----------------------------------------------------------------------------
def moco_forward(im_q, im_k, params_q, params_k, queue_dk, queue_ptr, *, m, T):
    """One MoCo forward step.

    Returns (logits, labels, new_params_k, new_queue, new_queue_ptr).
    queue_dk is the (D, K) queue buffer (bf16), matching the PyTorch layout.
    """
    w_q, b_q = params_q
    w_k, b_k = params_k
    n, c, h, w = im_q.shape
    hw = h * w
    d, K = queue_dk.shape
    assert K % n == 0  # MoCo's own assert; guarantees the enqueue window never wraps.

    # Momentum update of the key encoder (torch.no_grad): p_k = m*p_k + (1-m)*p_q.
    w_k = lax.stop_gradient(w_k * m + w_q * (1.0 - m))
    b_k = lax.stop_gradient(b_k * m + b_q * (1.0 - m))

    # Fold the global average pool into the fc weights (host-side, tiny):
    #   mean_s(x[n,c,s]) @ W^T  ==  x.reshape(n, c*hw) @ W_pool
    # with W_pool[c*hw + s, :] = W[:, c] / hw.
    # TODO(synk): for large C*HW replace the HW-fold replication with a two-stage
    # pool (x @ P_pool then @ W) to avoid the HW-times weight blowup.
    def pool_fold(weight):                 # weight: (D, C) nn.Linear layout
        return jnp.repeat(weight.T, hw, axis=0) * (1.0 / hw)

    x_q = im_q.reshape(n, c * hw)
    x_k = im_k.reshape(n, c * hw)

    # TODO(synk): _batch_shuffle_ddp / _batch_unshuffle_ddp and concat_all_gather
    # are DDP collectives; with world_size == 1 and a BatchNorm-free encoder they
    # are exact numerical no-ops and are omitted here.
    qs, kn, l_pos = moco_encode(
        x_q, pool_fold(w_q), b_q, x_k, pool_fold(w_k), b_k, T=T)

    l_neg = moco_l_neg(qs, queue_dk)                       # (N, K), already /T
    logits = jnp.concatenate([l_pos, l_neg], axis=1)       # (N, 1+K)
    labels = jnp.zeros((n,), dtype=jnp.int32)              # torch .long -> int32

    # _dequeue_and_enqueue: only the N new key columns are touched; the queue is
    # never streamed through the kernel for writeback.  In production, donate the
    # queue buffer to jit so this update is performed in place.
    new_queue = lax.dynamic_update_slice(
        queue_dk, kn.T.astype(queue_dk.dtype), (0, queue_ptr))
    new_ptr = (queue_ptr + n) % K
    return logits, labels, (w_k, b_k), new_queue, new_ptr


# -----------------------------------------------------------------------------
# Pure-jnp reference mirroring the PyTorch MoCo.forward_moco math (all f32)
# -----------------------------------------------------------------------------
def _reference_forward(im_q, im_k, params_q, params_k, queue_dk_f32, *, m, T):
    w_q, b_q = params_q
    w_k, b_k = params_k
    w_k = w_k * m + w_q * (1.0 - m)
    b_k = b_k * m + b_q * (1.0 - m)

    def encode(x, w, b):
        pooled = jnp.mean(x, axis=(2, 3))            # global average pool
        return pooled @ w.T + b

    def normalize(x):
        return x / jnp.maximum(jnp.sqrt(jnp.sum(x * x, axis=1, keepdims=True)), 1e-12)

    q = normalize(encode(im_q, w_q, b_q))
    k = normalize(encode(im_k, w_k, b_k))
    l_pos = jnp.sum(q * k, axis=1, keepdims=True)
    l_neg = q @ queue_dk_f32
    logits = jnp.concatenate([l_pos, l_neg], axis=1) / T
    return logits, k


# -----------------------------------------------------------------------------
if __name__ == "__main__":
    N, C, H, W = 8, 16, 8, 8      # batch of NCHW images
    DIM = 32                      # MoCo feature dimension
    K = 128                       # queue size (K % N == 0, as MoCo asserts)
    M_MOM = 0.999                 # key-encoder momentum
    TEMP = 0.07                   # temperature

    keys = jax.random.split(jax.random.PRNGKey(0), 5)

    im_q = jax.random.normal(keys[0], (N, C, H, W), dtype=jnp.float32)
    im_k = jax.random.normal(keys[1], (N, C, H, W), dtype=jnp.float32)

    # encoder_q fc: Linear(C -> DIM); encoder_k starts as an exact copy.
    w_q = jax.random.normal(keys[2], (DIM, C), dtype=jnp.float32) * 0.05
    b_q = jax.random.normal(keys[3], (1, DIM), dtype=jnp.float32) * 0.01
    params_q = (w_q, b_q)
    params_k = (w_q, b_q)

    # queue buffer: randn(dim, K), L2-normalized along dim=0 (as in __init__).
    queue_f32 = jax.random.normal(keys[4], (DIM, K), dtype=jnp.float32)
    queue_f32 = queue_f32 / jnp.maximum(
        jnp.sqrt(jnp.sum(queue_f32 * queue_f32, axis=0, keepdims=True)), 1e-12)
    queue_dk = queue_f32.astype(jnp.bfloat16)        # kernel state: (D, K) bf16
    queue_ptr = jnp.int32(0)

    fwd = jax.jit(functools.partial(moco_forward, m=M_MOM, T=TEMP))
    logits, labels, new_params_k, new_queue, new_ptr = fwd(
        im_q, im_k, params_q, params_k, queue_dk, queue_ptr)
    jax.block_until_ready(logits)
    jax.block_until_ready(new_queue)

    # shape / sanity checks
    assert logits.shape == (N, 1 + K), logits.shape
    assert labels.shape == (N,), labels.shape
    assert new_queue.shape == (DIM, K), new_queue.shape
    assert bool(jnp.all(jnp.isfinite(logits)))

    # numerical check against the spec formulation (f32 reference queue).
    ref_logits, ref_k = _reference_forward(
        im_q, im_k, params_q, params_k, queue_f32, m=M_MOM, T=TEMP)
    assert bool(jnp.allclose(logits, ref_logits, rtol=5e-2, atol=5e-2))
    # enqueue: columns [ptr, ptr+N) hold the new normalized keys; rest untouched.
    new_q_f32 = new_queue.astype(jnp.float32)
    assert bool(jnp.allclose(new_q_f32[:, :N], ref_k.T, rtol=5e-2, atol=5e-2))
    assert bool(jnp.array_equal(new_queue[:, N:], queue_dk[:, N:]))
    assert int(new_ptr) == (0 + N) % K

    print("KERNEL_OK")
</pallas_src>

<mosaic_0001>
module attributes {stable_mosaic.version = 11 : i64} {
  func.func @_moco_lneg_kernel(%arg0: i32, %arg1: memref<8x32xbf16, #tpu.memory_space<vmem>>, %arg2: memref<32x128xbf16, #tpu.memory_space<vmem>>, %arg3: memref<8x128xf32, #tpu.memory_space<vmem>>) attributes {dimension_semantics = [#tpu.dimension_semantics<parallel>], iteration_bounds = array<i64: 1>, scalar_prefetch = 0 : i64, scratch_operands = 0 : i64, tpu.core_type = #tpu.core_type<tc>, window_params = [{pipeline_mode = #tpu.pipeline_mode<synchronous>, transform_indices = @transform_0, window_bounds = array<i64: 8, 32>}, {transform_indices = @transform_1, window_bounds = array<i64: 32, 128>}, {transform_indices = @transform_2, window_bounds = array<i64: 8, 128>}]} {
    %c0 = arith.constant 0 : index
    %c0_0 = arith.constant 0 : index
    %0 = vector.load %arg1[%c0, %c0_0] : memref<8x32xbf16, #tpu.memory_space<vmem>>, vector<8x32xbf16>
    %c0_1 = arith.constant 0 : index
    %c0_2 = arith.constant 0 : index
    %1 = vector.load %arg2[%c0_1, %c0_2] : memref<32x128xbf16, #tpu.memory_space<vmem>>, vector<32x128xbf16>
    %cst = arith.constant dense<0.000000e+00> : vector<8x128xf32>
    %2 = tpu.matmul %0, %1, %cst {dimension_numbers = #tpu.dot_dimension_numbers<[1], [0], [0], [1], [0, 0, 1, 1], [], []>} : vector<8x32xbf16>, vector<32x128xbf16>, vector<8x128xf32> -> vector<8x128xf32>
    %c0_3 = arith.constant 0 : index
    %c0_4 = arith.constant 0 : index
    %3 = vector.load %arg3[%c0_3, %c0_4] : memref<8x128xf32, #tpu.memory_space<vmem>>, vector<8x128xf32>
    tpu.vector_store %arg3[%c0_3, %c0_4], %2 {strides = array<i32>} : memref<8x128xf32, #tpu.memory_space<vmem>>, vector<8x128xf32>,
    return
  }
  func.func @transform_0(%arg0: i32) -> (i32, i32) {
    %c0_i32 = arith.constant 0 : i32
    %c0_i32_0 = arith.constant 0 : i32
    %c0_i32_1 = arith.constant 0 : i32
    return %c0_i32, %c0_i32_0 : i32, i32
  }
  func.func @transform_1(%arg0: i32) -> (i32, i32) {
    %c0_i32 = arith.constant 0 : i32
    %c0_i32_0 = arith.constant 0 : i32
    return %c0_i32, %arg0 : i32, i32
  }
  func.func @transform_2(%arg0: i32) -> (i32, i32) {
    %c0_i32 = arith.constant 0 : i32
    %c0_i32_0 = arith.constant 0 : i32
    return %c0_i32, %arg0 : i32, i32
  }
}

module attributes {stable_mosaic.version = 11 : i64} {
  func.func @_moco_encode_kernel(%arg0: memref<8x1024xf32, #tpu.memory_space<vmem>>, %arg1: memref<1024x32xf32, #tpu.memory_space<vmem>>, %arg2: memref<1x32xf32, #tpu.memory_space<vmem>>, %arg3: memref<8x1024xf32, #tpu.memory_space<vmem>>, %arg4: memref<1024x32xf32, #tpu.memory_space<vmem>>, %arg5: memref<1x32xf32, #tpu.memory_space<vmem>>, %arg6: memref<8x32xbf16, #tpu.memory_space<vmem>>, %arg7: memref<8x32xf32, #tpu.memory_space<vmem>>, %arg8: memref<8x1xf32, #tpu.memory_space<vmem>>) attributes {dimension_semantics = [], scalar_prefetch = 0 : i64, scratch_operands = 0 : i64, tpu.core_type = #tpu.core_type<tc>} {
    %c0 = arith.constant 0 : index
    %c0_0 = arith.constant 0 : index
    %0 = vector.load %arg0[%c0, %c0_0] : memref<8x1024xf32, #tpu.memory_space<vmem>>, vector<8x1024xf32>
    %c0_1 = arith.constant 0 : index
    %c0_2 = arith.constant 0 : index
    %1 = vector.load %arg1[%c0_1, %c0_2] : memref<1024x32xf32, #tpu.memory_space<vmem>>, vector<1024x32xf32>
    %cst = arith.constant dense<0.000000e+00> : vector<8x32xf32>
    %2 = tpu.matmul %0, %1, %cst {dimension_numbers = #tpu.dot_dimension_numbers<[1], [0], [0], [1], [0, 0, 1, 1], [], []>} : vector<8x1024xf32>, vector<1024x32xf32>, vector<8x32xf32> -> vector<8x32xf32>
    %c0_3 = arith.constant 0 : index
    %c0_4 = arith.constant 0 : index
    %3 = vector.load %arg2[%c0_3, %c0_4] : memref<1x32xf32, #tpu.memory_space<vmem>>, vector<1x32xf32>
    %4 = vector.broadcast %3 : vector<1x32xf32> to vector<8x32xf32>
    %5 = arith.addf %2, %4 : vector<8x32xf32>
    %c0_5 = arith.constant 0 : index
    %c0_6 = arith.constant 0 : index
    %6 = vector.load %arg3[%c0_5, %c0_6] : memref<8x1024xf32, #tpu.memory_space<vmem>>, vector<8x1024xf32>
    %c0_7 = arith.constant 0 : index
    %c0_8 = arith.constant 0 : index
    %7 = vector.load %arg4[%c0_7, %c0_8] : memref<1024x32xf32, #tpu.memory_space<vmem>>, vector<1024x32xf32>
    %cst_9 = arith.constant dense<0.000000e+00> : vector<8x32xf32>
    %8 = tpu.matmul %6, %7, %cst_9 {dimension_numbers = #tpu.dot_dimension_numbers<[1], [0], [0], [1], [0, 0, 1, 1], [], []>} : vector<8x1024xf32>, vector<1024x32xf32>, vector<8x32xf32> -> vector<8x32xf32>
    %c0_10 = arith.constant 0 : index
    %c0_11 = arith.constant 0 : index
    %9 = vector.load %arg5[%c0_10, %c0_11] : memref<1x32xf32, #tpu.memory_space<vmem>>, vector<1x32xf32>
    %10 = vector.broadcast %9 : vector<1x32xf32> to vector<8x32xf32>
    %11 = arith.addf %8, %10 : vector<8x32xf32>
    %12 = arith.mulf %5, %5 : vector<8x32xf32>
    %cst_12 = arith.constant dense<0.000000e+00> : vector<8xf32>
    %13 = vector.multi_reduction <add>, %12, %cst_12 [1] : vector<8x32xf32> to vector<8xf32>
    %14 = vector.shape_cast %13 : vector<8xf32> to vector<8x1xf32>
    %cst_13 = arith.constant 1.000000e-24 : f32
    %15 = vector.broadcast %cst_13 : f32 to vector<8x1xf32>
    %16 = arith.maximumf %14, %15 : vector<8x1xf32>
    %17 = math.rsqrt %16 : vector<8x1xf32>
    %18 = vector.broadcast %17 : vector<8x1xf32> to vector<8x32xf32>
    %19 = arith.mulf %5, %18 : vector<8x32xf32>
    %20 = arith.mulf %11, %11 : vector<8x32xf32>
    %cst_14 = arith.constant dense<0.000000e+00> : vector<8xf32>
    %21 = vector.multi_reduction <add>, %20, %cst_14 [1] : vector<8x32xf32> to vector<8xf32>
    %22 = vector.shape_cast %21 : vector<8xf32> to vector<8x1xf32>
    %cst_15 = arith.constant 1.000000e-24 : f32
    %23 = vector.broadcast %cst_15 : f32 to vector<8x1xf32>
    %24 = arith.maximumf %22, %23 : vector<8x1xf32>
    %25 = math.rsqrt %24 : vector<8x1xf32>
    %26 = vector.broadcast %25 : vector<8x1xf32> to vector<8x32xf32>
    %27 = arith.mulf %11, %26 : vector<8x32xf32>
    %cst_16 = arith.constant 14.2857141 : f32
    %28 = vector.broadcast %cst_16 : f32 to vector<8x32xf32>
    %29 = arith.mulf %19, %28 : vector<8x32xf32>
    %30 = arith.mulf %29, %27 : vector<8x32xf32>
    %cst_17 = arith.constant dense<0.000000e+00> : vector<8xf32>
    %31 = vector.multi_reduction <add>, %30, %cst_17 [1] : vector<8x32xf32> to vector<8xf32>
    %32 = vector.shape_cast %31 : vector<8xf32> to vector<8x1xf32>
    %c0_18 = arith.constant 0 : index
    %c0_19 = arith.constant 0 : index
    %33 = vector.load %arg8[%c0_18, %c0_19] : memref<8x1xf32, #tpu.memory_space<vmem>>, vector<8x1xf32>
    tpu.vector_store %arg8[%c0_18, %c0_19], %32 {strides = array<i32>} : memref<8x1xf32, #tpu.memory_space<vmem>>, vector<8x1xf32>,
    %c0_20 = arith.constant 0 : index
    %c0_21 = arith.constant 0 : index
    %34 = vector.load %arg7[%c0_20, %c0_21] : memref<8x32xf32, #tpu.memory_space<vmem>>, vector<8x32xf32>
    tpu.vector_store %arg7[%c0_20, %c0_21], %27 {strides = array<i32>} : memref<8x32xf32, #tpu.memory_space<vmem>>, vector<8x32xf32>,
    %35 = arith.truncf %29 : vector<8x32xf32> to vector<8x32xbf16>
    %c0_22 = arith.constant 0 : index
    %c0_23 = arith.constant 0 : index
    %36 = vector.load %arg6[%c0_22, %c0_23] : memref<8x32xbf16, #tpu.memory_space<vmem>>, vector<8x32xbf16>
    tpu.vector_store %arg6[%c0_22, %c0_23], %35 {strides = array<i32>} : memref<8x32xbf16, #tpu.memory_space<vmem>>, vector<8x32xbf16>,
    return
  }
}

</mosaic_0001>

<bundles_post_ra>
// kernel: moco_forward.3
= control target key start
LH: loop header
LB: loop body
LE: loop exit
PB: predicated region body
PF: predicated region fallthrough
CT: control target
= control target key end

     0   :  { %v96_v0 = vmov 0.0   ;;  %vm97_vm0 = vmmov 0   ;;  %vm29_vm1 = vcmask 261120   ;;  %s125_s1 = inlined_call_operand.vmem [shape: bf16[32,128], index: 1, kind: input, shape index: {}]   ;;  %s126_s0 = inlined_call_operand.vmem [shape: bf16[8,32], index: 0, kind: input, shape index: {}]   ;;  %s127_s2 = inlined_call_operand.vmem [shape: f32[8,128], index: 2, kind: output, shape index: {}]  }
   0x1   :  { %84 = vmatprep.subr.bf16.mxu0 %v96_v0  ;;  %v94_v1 = vld [vmem:[%s125_s1] sm:$0xff]   ;;  %88 = vmatprep.mubr.msk.bf16.mxu0 %vm97_vm0, %v96_v0  ;;  %v95_v2 = vld [vmem:[%s125_s1 + $0x8] sm:$0xff]  }
   0x2   :  { %85 = vmatpush3.bf16.msra.mxu0 %v94_v1  ;;  %v12_v3 = vld [vmem:[%s126_s0] sm:$0xf] }
   0x3   :  { %86 = vmatprep.subr.bf16.mxu0 %v96_v0 }
   0x6   :  { %87 = vmatpush3.bf16.msra.mxu0 %v95_v2 }
   0x9   :  { %89 = vmatmul.mubr.msk.bf16.vlgmr.msra.gmra.mrb[0].mxu0 %vm29_vm1, %v12_v3 }
  0xdc   :  { %v67_v4 = vpop.f32.mrb[0].mxu0 }
  0xdd   :  { %73 = vst [vmem:[%s127_s2] sm:$0xff] %v67_v4  ;;  %v90_v5 = vpop.f32.mrb[1].mxu0 }
  0xde   :  { %v70_v6 = vpop.f32.mrb[2].mxu0 }
  0xdf   :  { %v91_v7 = vpop.f32.mrb[3].mxu0 }

// kernel: moco_forward.2
= control target key start
LH: loop header
LB: loop body
LE: loop exit
PB: predicated region body
PF: predicated region fallthrough
CT: control target
= control target key end

     0   :  { %vm873_vm0 = vcmask 261120   ;;  %vm896_vm1 = vcmask 257024   ;;  %vm892_vm2 = vcmask 7168   ;;  %s2332_s1 = inlined_call_operand.vmem [shape: f32[1024,32], index: 1, kind: input, shape index: {}]   ;;  %s2333_s0 = inlined_call_operand.vmem [shape: f32[8,1024], index: 0, kind: input, shape index: {}]   ;;  %s2334_s4 = inlined_call_operand.vmem [shape: f32[1024,32], index: 4, kind: input, shape index: {}]   ;;  %s2335_s3 = inlined_call_operand.vmem [shape: f32[8,1024], index: 3, kind: input, shape index: {}]   ;;  %s2336_s2 = inlined_call_operand.vmem [shape: f32[1,32], index: 2, kind: input, shape index: {}]   ;;  %s2337_s5 = inlined_call_operand.vmem [shape: f32[1,32], index: 5, kind: input, shape index: {}]   ;;  %s2338_s6 = inlined_call_operand.vmem [shape: bf16[8,32], index: 6, kind: output, shape index: {0}]   ;;  %s2339_s7 = inlined_call_operand.vmem [shape: f32[8,32], index: 7, kind: output, shape index: {1}]   ;;  %s2340_s8 = inlined_call_operand.vmem [shape: f32[8,1], index: 8, kind: output, shape index: {2}]  }
   0x1   :  { %v50_v0 = vld [vmem:[%s2332_s1 + $0x80] sm:$0xff]  ;;  %v51_v1 = vld [vmem:[%s2332_s1 + $0x88] sm:$0xff]  ;;  %v52_v11 = vld [vmem:[%s2332_s1 + $0x90] sm:$0xff] }
   0x2   :  { %v34_v2 = vld [vmem:[%s2332_s1] sm:$0xff]  ;;  %v1192_v3 = vpack.c.bf16 %v51_v1, %v50_v0  ;;  %v35_v4 = vld [vmem:[%s2332_s1 + $0x8] sm:$0xff]  ;;  %v53_v13 = vld [vmem:[%s2332_s1 + $0x98] sm:$0xff] }
   0x3   :  { %v82_v5 = vld [vmem:[%s2332_s1 + $0x180] sm:$0xff]  ;;  %v83_v6 = vld [vmem:[%s2332_s1 + $0x188] sm:$0xff]  ;;  %v1194_v7 = vpack.c.bf16 %v35_v4, %v34_v2  ;;  %v36_v14 = vld [vmem:[%s2332_s1 + $0x10] sm:$0xff]  ;;  %v1196_v16 = vpack.c.bf16 %v53_v13, %v52_v11 }
   0x4   :  { %v1224_v8 = vpack.c.bf16 %v83_v6, %v82_v5  ;;  %v66_v9 = vld [vmem:[%s2332_s1 + $0x100] sm:$0xff]  ;;  %v67_v10 = vld [vmem:[%s2332_s1 + $0x108] sm:$0xff]  ;;  %1193 = vmatprep.subr.bf16.mxu0 %v1192_v3  ;;  %v37_v15 = vld [vmem:[%s2332_s1 + $0x18] sm:$0xff] }
   0x5   :  { %v1226_v12 = vpack.c.bf16 %v67_v10, %v66_v9  ;;  %1195 = vmatpush3.bf16.msra.mxu0 %v1194_v7  ;;  %v1198_v17 = vpack.c.bf16 %v37_v15, %v36_v14  ;;  %v84_v18 = vld [vmem:[%s2332_s1 + $0x190] sm:$0xff]  ;;  %v85_v19 = vld [vmem:[%s2332_s1 + $0x198] sm:$0xff]  ;;  %v54_v23 = vld [vmem:[%s2332_s1 + $0xa0] sm:$0xff] }
   0x6   :  { %1225 = vmatprep.subr.bf16.mxu1 %v1224_v8  ;;  %v68_v20 = vld [vmem:[%s2332_s1 + $0x110] sm:$0xff]  ;;  %v1228_v21 = vpack.c.bf16 %v85_v19, %v84_v18  ;;  %v69_v22 = vld [vmem:[%s2332_s1 + $0x118] sm:$0xff]  ;;  %v55_v24 = vld [vmem:[%s2332_s1 + $0xa8] sm:$0xff]  ;;  %1197 = vmatprep.subr.bf16.mxu0 %v1196_v16 }
   0x7   :  { %1227 = vmatpush3.bf16.msra.mxu1 %v1226_v12  ;;  %v1230_v25 = vpack.c.bf16 %v69_v22, %v68_v20  ;;  %v1200_v26 = vpack.c.bf16 %v55_v24, %v54_v23  ;;  %v38_v27 = vld [vmem:[%s2332_s1 + $0x20] sm:$0xff]  ;;  %v39_v28 = vld [vmem:[%s2332_s1 + $0x28] sm:$0xff]  ;;  %v56_v35 = vld [vmem:[%s2332_s1 + $0xb0] sm:$0xff] }
   0x8   :  { %v86_v29 = vld [vmem:[%s2332_s1 + $0x1a0] sm:$0xff]  ;;  %1229 = vmatprep.subr.bf16.mxu1 %v1228_v21  ;;  %v87_v30 = vld [vmem:[%s2332_s1 + $0x1a8] sm:$0xff]  ;;  %v1202_v33 = vpack.c.bf16 %v39_v28, %v38_v27  ;;  %v57_v36 = vld [vmem:[%s2332_s1 + $0xb8] sm:$0xff] }
   0x9   :  { %v70_v31 = vld [vmem:[%s2332_s1 + $0x120] sm:$0xff]  ;;  %v71_v32 = vld [vmem:[%s2332_s1 + $0x128] sm:$0xff]  ;;  %1199 = vmatpush3.bf16.msra.mxu0 %v1198_v17  ;;  %v1232_v34 = vpack.c.bf16 %v87_v30, %v86_v29  ;;  %v40_v37 = vld [vmem:[%s2332_s1 + $0x30] sm:$0xff]  ;;  %v1204_v39 = vpack.c.bf16 %v57_v36, %v56_v35 }
   0xa   :  { %1201 = vmatprep.subr.bf16.mxu0 %v1200_v26  ;;  %v1234_v38 = vpack.c.bf16 %v71_v32, %v70_v31  ;;  %v41_v40 = vld [vmem:[%s2332_s1 + $0x38] sm:$0xff]  ;;  %v88_v41 = vld [vmem:[%s2332_s1 + $0x1b0] sm:$0xff]  ;;  %v58_v46 = vld [vmem:[%s2332_s1 + $0xc0] sm:$0xff] }
   0xb   :  { %1231 = vmatpush3.bf16.msra.mxu1 %v1230_v25  ;;  %v89_v42 = vld [vmem:[%s2332_s1 + $0x1b8] sm:$0xff]  ;;  %v72_v44 = vld [vmem:[%s2332_s1 + $0x130] sm:$0xff]  ;;  %v59_v47 = vld [vmem:[%s2332_s1 + $0xc8] sm:$0xff]  ;;  %v1206_v48 = vpack.c.bf16 %v41_v40, %v40_v37 }
   0xc   :  { %1233 = vmatprep.subr.bf16.mxu1 %v1232_v34  ;;  %v1236_v43 = vpack.c.bf16 %v89_v42, %v88_v41  ;;  %v73_v45 = vld [vmem:[%s2332_s1 + $0x138] sm:$0xff]  ;;  %v90_v49 = vld [vmem:[%s2332_s1 + $0x1c0] sm:$0xff]  ;;  %v91_v50 = vld [vmem:[%s2332_s1 + $0x1c8] sm:$0xff]  ;;  %v1208_v52 = vpack.c.bf16 %v59_v47, %v58_v46 }
   0xd   :  { %1203 = vmatpush3.bf16.msra.mxu0 %v1202_v33  ;;  %v1238_v51 = vpack.c.bf16 %v73_v45, %v72_v44  ;;  %v42_v53 = vld [vmem:[%s2332_s1 + $0x40] sm:$0xff]  ;;  %v43_v54 = vld [vmem:[%s2332_s1 + $0x48] sm:$0xff]  ;;  %v1240_v56 = vpack.c.bf16 %v91_v50, %v90_v49  ;;  %v60_v58 = vld [vmem:[%s2332_s1 + $0xd0] sm:$0xff] }
   0xe   :  { %1205 = vmatprep.subr.bf16.mxu0 %v1204_v39  ;;  %v74_v55 = vld [vmem:[%s2332_s1 + $0x140] sm:$0xff]  ;;  %v75_v57 = vld [vmem:[%s2332_s1 + $0x148] sm:$0xff]  ;;  %v61_v59 = vld [vmem:[%s2332_s1 + $0xd8] sm:$0xff]  ;;  %v1210_v62 = vpack.c.bf16 %v43_v54, %v42_v53 }
   0xf   :  { %1235 = vmatpush3.bf16.msra.mxu1 %v1234_v38  ;;  %v92_v60 = vld [vmem:[%s2332_s1 + $0x1d0] sm:$0xff]  ;;  %v93_v61 = vld [vmem:[%s2332_s1 + $0x1d8] sm:$0xff]  ;;  %v1242_v63 = vpack.c.bf16 %v75_v57, %v74_v55  ;;  %v1212_v0 = vpack.c.bf16 %v61_v59, %v60_v58  ;;  %v62_v6 = vld [vmem:[%s2332_s1 + $0xe0] sm:$0xff] }
  0x10   :  { %1237 = vmatprep.subr.bf16.mxu1 %v1236_v43  ;;  %v44_v1 = vld [vmem:[%s2332_s1 + $0x50] sm:$0xff]  ;;  %v45_v2 = vld [vmem:[%s2332_s1 + $0x58] sm:$0xff]  ;;  %v1244_v4 = vpack.c.bf16 %v93_v61, %v92_v60  ;;  %v63_v7 = vld [vmem:[%s2332_s1 + $0xe8] sm:$0xff] }
  0x11   :  { %1207 = vmatpush3.bf16.msra.mxu0 %v1206_v48  ;;  %v76_v3 = vld [vmem:[%s2332_s1 + $0x150] sm:$0xff]  ;;  %v77_v5 = vld [vmem:[%s2332_s1 + $0x158] sm:$0xff]  ;;  %v94_v8 = vld [vmem:[%s2332_s1 + $0x1e0] sm:$0xff]  ;;  %v1214_v10 = vpack.c.bf16 %v45_v2, %v44_v1  ;;  %v1216_v14 = vpack.c.bf16 %v63_v7, %v62_v6 }
  0x12   :  { %1209 = vmatprep.subr.bf16.mxu0 %v1208_v52  ;;  %v95_v9 = vld [vmem:[%s2332_s1 + $0x1e8] sm:$0xff]  ;;  %v46_v11 = vld [vmem:[%s2332_s1 + $0x60] sm:$0xff]  ;;  %v1246_v13 = vpack.c.bf16 %v77_v5, %v76_v3  ;;  %v64_v19 = vld [vmem:[%s2332_s1 + $0xf0] sm:$0xff] }
  0x13   :  { %1239 = vmatpush3.bf16.msra.mxu1 %v1238_v51  ;;  %v47_v12 = vld [vmem:[%s2332_s1 + $0x68] sm:$0xff]  ;;  %v78_v15 = vld [vmem:[%s2332_s1 + $0x160] sm:$0xff]  ;;  %v1248_v18 = vpack.c.bf16 %v95_v9, %v94_v8  ;;  %v65_v20 = vld [vmem:[%s2332_s1 + $0xf8] sm:$0xff] }
  0x14   :  { %1241 = vmatprep.subr.bf16.mxu1 %v1240_v56  ;;  %v79_v16 = vld [vmem:[%s2332_s1 + $0x168] sm:$0xff]  ;;  %v29_v21 = vld [vmem:[%s2333_s0 + $0x18] sm:$0xff]  ;;  %v96_v22 = vld [vmem:[%s2332_s1 + $0x1f0] sm:$0xff]  ;;  %v1218_v24 = vpack.c.bf16 %v47_v12, %v46_v11  ;;  %v1220_v26 = vpack.c.bf16 %v65_v20, %v64_v19 }
  0x15   :  { %1211 = vmatpush3.bf16.msra.mxu0 %v1210_v62  ;;  %v27_v17 = vld [vmem:[%s2333_s0 + $0x8] sm:$0xff]  ;;  %v97_v23 = vld [vmem:[%s2332_s1 + $0x1f8] sm:$0xff]  ;;  %303 = vmatprep.mubr.f32.mxu1 %v29_v21  ;;  %v1250_v25 = vpack.c.bf16 %v79_v16, %v78_v15  ;;  %v48_v27 = vld [vmem:[%s2332_s1 + $0x70] sm:$0xff] }
  0x16   :  { %1213 = vmatprep.subr.bf16.mxu0 %v1212_v0  ;;  %233 = vmatprep.mubr.f32.mxu0 %v27_v17  ;;  %v49_v28 = vld [vmem:[%s2332_s1 + $0x78] sm:$0xff]  ;;  %v80_v29 = vld [vmem:[%s2332_s1 + $0x170] sm:$0xff]  ;;  %v1252_v30 = vpack.c.bf16 %v97_v23, %v96_v22  ;;  %v114_v32 = vld [vmem:[%s2332_s1 + $0x280] sm:$0xff] }
  0x17   :  { %1243 = vmatpush3.bf16.msra.mxu1 %v1242_v63  ;;  %v81_v31 = vld [vmem:[%s2332_s1 + $0x178] sm:$0xff]  ;;  %v115_v33 = vld [vmem:[%s2332_s1 + $0x288] sm:$0xff]  ;;  %v146_v34 = vld [vmem:[%s2332_s1 + $0x380] sm:$0xff]  ;;  %v1222_v36 = vpack.c.bf16 %v49_v28, %v48_v27 }
  0x18   :  { %1245 = vmatprep.subr.bf16.mxu1 %v1244_v4  ;;  %v147_v35 = vld [vmem:[%s2332_s1 + $0x388] sm:$0xff]  ;;  %v1254_v37 = vpack.c.bf16 %v81_v31, %v80_v29  ;;  %v1256_v38 = vpack.c.bf16 %v115_v33, %v114_v32  ;;  %v98_v39 = vld [vmem:[%s2332_s1 + $0x200] sm:$0xff]  ;;  %v116_v44 = vld [vmem:[%s2332_s1 + $0x290] sm:$0xff] }
  0x19   :  { %1215 = vmatpush3.bf16.msra.mxu0 %v1214_v10  ;;  %v99_v40 = vld [vmem:[%s2332_s1 + $0x208] sm:$0xff]  ;;  %v130_v41 = vld [vmem:[%s2332_s1 + $0x300] sm:$0xff]  ;;  %v1288_v42 = vpack.c.bf16 %v147_v35, %v146_v34  ;;  %v117_v45 = vld [vmem:[%s2332_s1 + $0x298] sm:$0xff] }
  0x1a   :  { %1217 = vmatprep.subr.bf16.mxu0 %v1216_v14  ;;  %v131_v43 = vld [vmem:[%s2332_s1 + $0x308] sm:$0xff]  ;;  %v148_v46 = vld [vmem:[%s2332_s1 + $0x390] sm:$0xff]  ;;  %v149_v47 = vld [vmem:[%s2332_s1 + $0x398] sm:$0xff]  ;;  %v1258_v49 = vpack.c.bf16 %v99_v40, %v98_v39  ;;  %v1260_v52 = vpack.c.bf16 %v117_v45, %v116_v44 }
  0x1b   :  { %1247 = vmatpush3.bf16.msra.mxu1 %v1246_v13  ;;  %v26_v48 = vld [vmem:[%s2333_s0] sm:$0xff]  ;;  %v28_v50 = vld [vmem:[%s2333_s0 + $0x10] sm:$0xff]  ;;  %v1290_v51 = vpack.c.bf16 %v131_v43, %v130_v41  ;;  %v101_v54 = vld [vmem:[%s2332_s1 + $0x218] sm:$0xff]  ;;  %v1292_v56 = vpack.c.bf16 %v149_v47, %v148_v46 }
  0x1c   :  { %1249 = vmatprep.subr.bf16.mxu1 %v1248_v18  ;;  %v100_v53 = vld [vmem:[%s2332_s1 + $0x210] sm:$0xff]  ;;  %v133_v57 = vld [vmem:[%s2332_s1 + $0x318] sm:$0xff]  ;;  %v118_v58 = vld [vmem:[%s2332_s1 + $0x2a0] sm:$0xff] }
  0x1d   :  { %1219 = vmatpush3.bf16.msra.mxu0 %v1218_v24  ;;  %v132_v55 = vld [vmem:[%s2332_s1 + $0x310] sm:$0xff]  ;;  %v119_v59 = vld [vmem:[%s2332_s1 + $0x2a8] sm:$0xff]  ;;  %v150_v60 = vld [vmem:[%s2332_s1 + $0x3a0] sm:$0xff]  ;;  %v1262_v62 = vpack.c.bf16 %v101_v54, %v100_v53 }
  0x1e   :  { %1221 = vmatprep.subr.bf16.mxu0 %v1220_v26  ;;  %v151_v61 = vld [vmem:[%s2332_s1 + $0x3a8] sm:$0xff]  ;;  %v1294_v63 = vpack.c.bf16 %v133_v57, %v132_v55  ;;  %v1264_v0 = vpack.c.bf16 %v119_v59, %v118_v58  ;;  %v102_v1 = vld [vmem:[%s2332_s1 + $0x220] sm:$0xff]  ;;  %v120_v6 = vld [vmem:[%s2332_s1 + $0x2b0] sm:$0xff] }
  0x1f   :  { %1251 = vmatpush3.bf16.msra.mxu1 %v1250_v25  ;;  %v103_v2 = vld [vmem:[%s2332_s1 + $0x228] sm:$0xff]  ;;  %v134_v3 = vld [vmem:[%s2332_s1 + $0x320] sm:$0xff]  ;;  %v1296_v4 = vpack.c.bf16 %v151_v61, %v150_v60  ;;  %v121_v7 = vld [vmem:[%s2332_s1 + $0x2b8] sm:$0xff] }
  0x20   :  { %1253 = vmatprep.subr.bf16.mxu1 %v1252_v30  ;;  %v135_v5 = vld [vmem:[%s2332_s1 + $0x328] sm:$0xff]  ;;  %v152_v8 = vld [vmem:[%s2332_s1 + $0x3b0] sm:$0xff]  ;;  %v153_v9 = vld [vmem:[%s2332_s1 + $0x3b8] sm:$0xff]  ;;  %v1266_v10 = vpack.c.bf16 %v103_v2, %v102_v1  ;;  %v1268_v12 = vpack.c.bf16 %v121_v7, %v120_v6 }
  0x21   :  { %1223 = vmatpush3.bf16.msra.mxu0 %v1222_v36  ;;  %v1298_v11 = vpack.c.bf16 %v135_v5, %v134_v3  ;;  %v104_v13 = vld [vmem:[%s2332_s1 + $0x230] sm:$0xff]  ;;  %v105_v14 = vld [vmem:[%s2332_s1 + $0x238] sm:$0xff]  ;;  %v1300_v16 = vpack.c.bf16 %v153_v9, %v152_v8  ;;  %v122_v18 = vld [vmem:[%s2332_s1 + $0x2c0] sm:$0xff] }
  0x22   :  { %1257 = vmatprep.subr.bf16.mxu0 %v1256_v38  ;;  %v136_v15 = vld [vmem:[%s2332_s1 + $0x330] sm:$0xff]  ;;  %v137_v17 = vld [vmem:[%s2332_s1 + $0x338] sm:$0xff]  ;;  %v123_v19 = vld [vmem:[%s2332_s1 + $0x2c8] sm:$0xff]  ;;  %v1270_v22 = vpack.c.bf16 %v105_v14, %v104_v13 }
  0x23   :  { %1255 = vmatpush3.bf16.msra.mxu1 %v1254_v37  ;;  %v154_v20 = vld [vmem:[%s2332_s1 + $0x3c0] sm:$0xff]  ;;  %v155_v21 = vld [vmem:[%s2332_s1 + $0x3c8] sm:$0xff]  ;;  %v1302_v25 = vpack.c.bf16 %v137_v17, %v136_v15  ;;  %v1272_v26 = vpack.c.bf16 %v123_v19, %v122_v18  ;;  %v33_v29 = vld [vmem:[%s2333_s0 + $0x38] sm:$0xff] }
  0x24   :  { %1289 = vmatprep.subr.bf16.mxu1 %v1288_v42  ;;  %234 = vmatmul.mubr.f32.vlgmr.msra.gmra.mrb[0].mxu0 %v26_v48  ;;  %v106_v23 = vld [vmem:[%s2332_s1 + $0x240] sm:$0xff]  ;;  %v31_v24 = vld [vmem:[%s2333_s0 + $0x28] sm:$0xff]  ;;  %v1304_v30 = vpack.c.bf16 %v155_v21, %v154_v20  ;;  %v124_v32 = vld [vmem:[%s2332_s1 + $0x2d0] sm:$0xff] }
  0x25   :  { %1259 = vmatpush3.bf16.msra.mxu0 %v1258_v49  ;;  %v107_v27 = vld [vmem:[%s2332_s1 + $0x248] sm:$0xff]  ;;  %v138_v28 = vld [vmem:[%s2332_s1 + $0x340] sm:$0xff]  ;;  %v125_v33 = vld [vmem:[%s2332_s1 + $0x2d8] sm:$0xff]  ;;  %373 = vmatprep.mubr.f32.mxu0 %v31_v24 }
  0x26   :  { %304 = vmatmul.mubr.f32.vlgmr.msra.gmra.mrb[0].mxu1 %v28_v50  ;;  %1261 = vmatprep.subr.bf16.mxu0 %v1260_v52  ;;  %v139_v31 = vld [vmem:[%s2332_s1 + $0x348] sm:$0xff]  ;;  %v156_v34 = vld [vmem:[%s2332_s1 + $0x3d0] sm:$0xff]  ;;  %v157_v35 = vld [vmem:[%s2332_s1 + $0x3d8] sm:$0xff]  ;;  %v1274_v36 = vpack.c.bf16 %v107_v27, %v106_v23  ;;  %v1276_v38 = vpack.c.bf16 %v125_v33, %v124_v32 }
  0x27   :  { %1291 = vmatpush3.bf16.msra.mxu1 %v1290_v51  ;;  %443 = vmatprep.mubr.f32.mxu1 %v33_v29  ;;  %v1306_v37 = vpack.c.bf16 %v139_v31, %v138_v28  ;;  %v108_v39 = vld [vmem:[%s2332_s1 + $0x250] sm:$0xff]  ;;  %v109_v40 = vld [vmem:[%s2332_s1 + $0x258] sm:$0xff]  ;;  %v1308_v42 = vpack.c.bf16 %v157_v35, %v156_v34  ;;  %v126_v44 = vld [vmem:[%s2332_s1 + $0x2e0] sm:$0xff] }
  0x28   :  { %1293 = vmatprep.subr.bf16.mxu1 %v1292_v56  ;;  %v140_v41 = vld [vmem:[%s2332_s1 + $0x350] sm:$0xff]  ;;  %v141_v43 = vld [vmem:[%s2332_s1 + $0x358] sm:$0xff]  ;;  %v127_v45 = vld [vmem:[%s2332_s1 + $0x2e8] sm:$0xff]  ;;  %v1278_v48 = vpack.c.bf16 %v109_v40, %v108_v39 }
  0x29   :  { %1263 = vmatpush3.bf16.msra.mxu0 %v1262_v62  ;;  %v158_v46 = vld [vmem:[%s2332_s1 + $0x3e0] sm:$0xff]  ;;  %v159_v47 = vld [vmem:[%s2332_s1 + $0x3e8] sm:$0xff]  ;;  %v1310_v49 = vpack.c.bf16 %v141_v43, %v140_v41  ;;  %v1280_v50 = vpack.c.bf16 %v127_v45, %v126_v44  ;;  %v128_v56 = vld [vmem:[%s2332_s1 + $0x2f0] sm:$0xff] }
  0x2a   :  { %1265 = vmatprep.subr.bf16.mxu0 %v1264_v0  ;;  %v110_v51 = vld [vmem:[%s2332_s1 + $0x260] sm:$0xff]  ;;  %v111_v52 = vld [vmem:[%s2332_s1 + $0x268] sm:$0xff]  ;;  %v1312_v54 = vpack.c.bf16 %v159_v47, %v158_v46  ;;  %v129_v57 = vld [vmem:[%s2332_s1 + $0x2f8] sm:$0xff] }
  0x2b   :  { %1295 = vmatpush3.bf16.msra.mxu1 %v1294_v63  ;;  %v142_v53 = vld [vmem:[%s2332_s1 + $0x360] sm:$0xff]  ;;  %v143_v55 = vld [vmem:[%s2332_s1 + $0x368] sm:$0xff]  ;;  %v160_v58 = vld [vmem:[%s2332_s1 + $0x3f0] sm:$0xff]  ;;  %v1282_v60 = vpack.c.bf16 %v111_v52, %v110_v51  ;;  %v1284_v62 = vpack.c.bf16 %v129_v57, %v128_v56 }
  0x2c   :  { %1297 = vmatprep.subr.bf16.mxu1 %v1296_v4  ;;  %v161_v59 = vld [vmem:[%s2332_s1 + $0x3f8] sm:$0xff]  ;;  %v1314_v61 = vpack.c.bf16 %v143_v55, %v142_v53  ;;  %v112_v63 = vld [vmem:[%s2332_s1 + $0x270] sm:$0xff]  ;;  %v473_v4 = vld [vmem:[%s2334_s4 + $0x80] sm:$0xff] }
  0x2d   :  { %1267 = vmatpush3.bf16.msra.mxu0 %v1266_v10  ;;  %v113_v0 = vld [vmem:[%s2332_s1 + $0x278] sm:$0xff]  ;;  %v144_v1 = vld [vmem:[%s2332_s1 + $0x370] sm:$0xff]  ;;  %v1316_v2 = vpack.c.bf16 %v161_v59, %v160_v58  ;;  %v474_v5 = vld [vmem:[%s2334_s4 + $0x88] sm:$0xff] }
  0x2e   :  { %1269 = vmatprep.subr.bf16.mxu0 %v1268_v12  ;;  %v145_v3 = vld [vmem:[%s2332_s1 + $0x378] sm:$0xff]  ;;  %v505_v6 = vld [vmem:[%s2334_s4 + $0x180] sm:$0xff]  ;;  %v506_v7 = vld [vmem:[%s2334_s4 + $0x188] sm:$0xff]  ;;  %v1286_v8 = vpack.c.bf16 %v113_v0, %v112_v63  ;;  %v1320_v10 = vpack.c.bf16 %v474_v5, %v473_v4 }
  0x2f   :  { %1299 = vmatpush3.bf16.msra.mxu1 %v1298_v11  ;;  %v1318_v9 = vpack.c.bf16 %v145_v3, %v144_v1  ;;  %v457_v11 = vld [vmem:[%s2334_s4] sm:$0xff]  ;;  %v458_v12 = vld [vmem:[%s2334_s4 + $0x8] sm:$0xff]  ;;  %v1352_v14 = vpack.c.bf16 %v506_v7, %v505_v6  ;;  %v476_v17 = vld [vmem:[%s2334_s4 + $0x98] sm:$0xff] }
  0x30   :  { %1301 = vmatprep.subr.bf16.mxu1 %v1300_v16  ;;  %v489_v13 = vld [vmem:[%s2334_s4 + $0x100] sm:$0xff]  ;;  %v490_v15 = vld [vmem:[%s2334_s4 + $0x108] sm:$0xff]  ;;  %v475_v16 = vld [vmem:[%s2334_s4 + $0x90] sm:$0xff]  ;;  %v1322_v21 = vpack.c.bf16 %v458_v12, %v457_v11 }
  0x31   :  { %1271 = vmatpush3.bf16.msra.mxu0 %v1270_v22  ;;  %v507_v18 = vld [vmem:[%s2334_s4 + $0x190] sm:$0xff]  ;;  %v508_v19 = vld [vmem:[%s2334_s4 + $0x198] sm:$0xff]  ;;  %v30_v20 = vld [vmem:[%s2333_s0 + $0x20] sm:$0xff]  ;;  %v1354_v23 = vpack.c.bf16 %v490_v15, %v489_v13  ;;  %v1324_v24 = vpack.c.bf16 %v476_v17, %v475_v16 }
  0x32   :  { %1273 = vmatprep.subr.bf16.mxu0 %v1272_v26  ;;  %v32_v22 = vld [vmem:[%s2333_s0 + $0x30] sm:$0xff]  ;;  %v460_v26 = vld [vmem:[%s2334_s4 + $0x18] sm:$0xff]  ;;  %v1356_v28 = vpack.c.bf16 %v508_v19, %v507_v18  ;;  %v478_v31 = vld [vmem:[%s2334_s4 + $0xa8] sm:$0xff] }
  0x33   :  { %1303 = vmatpush3.bf16.msra.mxu1 %v1302_v25  ;;  %v459_v25 = vld [vmem:[%s2334_s4 + $0x10] sm:$0xff]  ;;  %v492_v29 = vld [vmem:[%s2334_s4 + $0x118] sm:$0xff]  ;;  %v509_v32 = vld [vmem:[%s2334_s4 + $0x1a0] sm:$0xff] }
  0x34   :  { %1305 = vmatprep.subr.bf16.mxu1 %v1304_v30  ;;  %v491_v27 = vld [vmem:[%s2334_s4 + $0x110] sm:$0xff]  ;;  %v477_v30 = vld [vmem:[%s2334_s4 + $0xa0] sm:$0xff]  ;;  %v510_v33 = vld [vmem:[%s2334_s4 + $0x1a8] sm:$0xff]  ;;  %v1326_v35 = vpack.c.bf16 %v460_v26, %v459_v25 }
  0x35   :  { %1275 = vmatpush3.bf16.msra.mxu0 %v1274_v36  ;;  %v450_v34 = vld [vmem:[%s2335_s3 + $0x8] sm:$0xff]  ;;  %v452_v36 = vld [vmem:[%s2335_s3 + $0x18] sm:$0xff]  ;;  %v461_v39 = vld [vmem:[%s2334_s4 + $0x20] sm:$0xff] }
  0x36   :  { %1277 = vmatprep.subr.bf16.mxu0 %v1276_v38  ;;  %v1328_v38 = vpack.c.bf16 %v478_v31, %v477_v30  ;;  %v462_v40 = vld [vmem:[%s2334_s4 + $0x28] sm:$0xff]  ;;  %v493_v41 = vld [vmem:[%s2334_s4 + $0x120] sm:$0xff]  ;;  %v479_v44 = vld [vmem:[%s2334_s4 + $0xb0] sm:$0xff] }
  0x37   :  { %1307 = vmatpush3.bf16.msra.mxu1 %v1306_v37  ;;  %v1358_v37 = vpack.c.bf16 %v492_v29, %v491_v27  ;;  %v494_v43 = vld [vmem:[%s2334_s4 + $0x128] sm:$0xff]  ;;  %v480_v45 = vld [vmem:[%s2334_s4 + $0xb8] sm:$0xff]  ;;  %v511_v46 = vld [vmem:[%s2334_s4 + $0x1b0] sm:$0xff] }
  0x38   :  { %1309 = vmatprep.subr.bf16.mxu1 %v1308_v42  ;;  %v1360_v42 = vpack.c.bf16 %v510_v33, %v509_v32  ;;  %v512_v47 = vld [vmem:[%s2334_s4 + $0x1b8] sm:$0xff]  ;;  %v463_v51 = vld [vmem:[%s2334_s4 + $0x30] sm:$0xff]  ;;  %v481_v56 = vld [vmem:[%s2334_s4 + $0xc0] sm:$0xff] }
  0x39   :  { %1279 = vmatpush3.bf16.msra.mxu0 %v1278_v48  ;;  %v1330_v48 = vpack.c.bf16 %v462_v40, %v461_v39  ;;  %v464_v52 = vld [vmem:[%s2334_s4 + $0x38] sm:$0xff]  ;;  %v495_v53 = vld [vmem:[%s2334_s4 + $0x130] sm:$0xff]  ;;  %v482_v57 = vld [vmem:[%s2334_s4 + $0xc8] sm:$0xff] }
  0x3a   :  { %1281 = vmatprep.subr.bf16.mxu0 %v1280_v50  ;;  %v1332_v50 = vpack.c.bf16 %v480_v45, %v479_v44  ;;  %v496_v55 = vld [vmem:[%s2334_s4 + $0x138] sm:$0xff]  ;;  %v513_v58 = vld [vmem:[%s2334_s4 + $0x1c0] sm:$0xff]  ;;  %v514_v59 = vld [vmem:[%s2334_s4 + $0x1c8] sm:$0xff] }
  0x3b   :  { %1311 = vmatpush3.bf16.msra.mxu1 %v1310_v49  ;;  %v1362_v49 = vpack.c.bf16 %v494_v43, %v493_v41  ;;  %v465_v63 = vld [vmem:[%s2334_s4 + $0x40] sm:$0xff]  ;;  %v466_v0 = vld [vmem:[%s2334_s4 + $0x48] sm:$0xff]  ;;  %v483_v4 = vld [vmem:[%s2334_s4 + $0xd0] sm:$0xff] }
  0x3c   :  { %1313 = vmatprep.subr.bf16.mxu1 %v1312_v54  ;;  %v1364_v54 = vpack.c.bf16 %v512_v47, %v511_v46  ;;  %v497_v1 = vld [vmem:[%s2334_s4 + $0x140] sm:$0xff]  ;;  %v498_v3 = vld [vmem:[%s2334_s4 + $0x148] sm:$0xff]  ;;  %v484_v5 = vld [vmem:[%s2334_s4 + $0xd8] sm:$0xff] }
  0x3d   :  { %1283 = vmatpush3.bf16.msra.mxu0 %v1282_v60  ;;  %v1334_v60 = vpack.c.bf16 %v464_v52, %v463_v51  ;;  %v515_v6 = vld [vmem:[%s2334_s4 + $0x1d0] sm:$0xff]  ;;  %v516_v7 = vld [vmem:[%s2334_s4 + $0x1d8] sm:$0xff]  ;;  %v485_v16 = vld [vmem:[%s2334_s4 + $0xe0] sm:$0xff] }
  0x3e   :  { %1285 = vmatprep.subr.bf16.mxu0 %v1284_v62  ;;  %v1336_v62 = vpack.c.bf16 %v482_v57, %v481_v56  ;;  %v467_v11 = vld [vmem:[%s2334_s4 + $0x50] sm:$0xff]  ;;  %v468_v12 = vld [vmem:[%s2334_s4 + $0x58] sm:$0xff]  ;;  %v486_v17 = vld [vmem:[%s2334_s4 + $0xe8] sm:$0xff] }
  0x3f   :  { %1315 = vmatpush3.bf16.msra.mxu1 %v1314_v61  ;;  %v1366_v61 = vpack.c.bf16 %v496_v55, %v495_v53  ;;  %v499_v13 = vld [vmem:[%s2334_s4 + $0x150] sm:$0xff]  ;;  %v500_v15 = vld [vmem:[%s2334_s4 + $0x158] sm:$0xff]  ;;  %v517_v18 = vld [vmem:[%s2334_s4 + $0x1e0] sm:$0xff] }
  0x40   :  { %1317 = vmatprep.subr.bf16.mxu1 %v1316_v2  ;;  %v1368_v2 = vpack.c.bf16 %v514_v59, %v513_v58  ;;  %v518_v19 = vld [vmem:[%s2334_s4 + $0x1e8] sm:$0xff]  ;;  %v501_v25 = vld [vmem:[%s2334_s4 + $0x160] sm:$0xff]  ;;  %v488_v29 = vld [vmem:[%s2334_s4 + $0xf8] sm:$0xff] }
  0x41   :  { %1287 = vmatpush3.bf16.msra.mxu0 %v1286_v8  ;;  %v1338_v8 = vpack.c.bf16 %v466_v0, %v465_v63  ;;  %v1376_v26 = vpack.c.bf16 %v518_v19, %v517_v18  ;;  %v502_v27 = vld [vmem:[%s2334_s4 + $0x168] sm:$0xff]  ;;  %v519_v30 = vld [vmem:[%s2334_s4 + $0x1f0] sm:$0xff]  ;;  %v520_v31 = vld [vmem:[%s2334_s4 + $0x1f8] sm:$0xff] }
  0x42   :  { %1321 = vmatprep.subr.bf16.mxu0 %v1320_v10  ;;  %v1340_v10 = vpack.c.bf16 %v484_v5, %v483_v4  ;;  %v1378_v33 = vpack.c.bf16 %v502_v27, %v501_v25  ;;  %v504_v39 = vld [vmem:[%s2334_s4 + $0x178] sm:$0xff]  ;;  %v537_v40 = vld [vmem:[%s2334_s4 + $0x280] sm:$0xff]  ;;  %v538_v41 = vld [vmem:[%s2334_s4 + $0x288] sm:$0xff] }
  0x43   :  { %1319 = vmatpush3.bf16.msra.mxu1 %v1318_v9  ;;  %v1370_v9 = vpack.c.bf16 %v498_v3, %v497_v1  ;;  %v570_v43 = vld [vmem:[%s2334_s4 + $0x388] sm:$0xff]  ;;  %v1384_v46 = vpack.c.bf16 %v538_v41, %v537_v40  ;;  %v521_v47 = vld [vmem:[%s2334_s4 + $0x200] sm:$0xff]  ;;  %v539_v52 = vld [vmem:[%s2334_s4 + $0x290] sm:$0xff] }
  0x44   :  { %1353 = vmatprep.subr.bf16.mxu1 %v1352_v14  ;;  %374 = vmatmul.mubr.f32.vlgmr.msra.gmra.mrb[2].mxu0 %v30_v20  ;;  %v1372_v14 = vpack.c.bf16 %v516_v7, %v515_v6  ;;  %v1342_v20 = vpack.c.bf16 %v468_v12, %v467_v11  ;;  %v554_v51 = vld [vmem:[%s2334_s4 + $0x308] sm:$0xff]  ;;  %v540_v53 = vld [vmem:[%s2334_s4 + $0x298] sm:$0xff]  ;;  %v449_v56 = vld [vmem:[%s2335_s3] sm:$0xff] }
  0x45   :  { %1323 = vmatpush3.bf16.msra.mxu0 %v1322_v21  ;;  %656 = vmatprep.mubr.f32.mxu0 %v450_v34  ;;  %v1374_v21 = vpack.c.bf16 %v500_v15, %v499_v13  ;;  %v572_v55 = vld [vmem:[%s2334_s4 + $0x398] sm:$0xff]  ;;  %v451_v58 = vld [vmem:[%s2335_s3 + $0x10] sm:$0xff]  ;;  %v542_v3 = vld [vmem:[%s2334_s4 + $0x2a8] sm:$0xff] }
  0x46   :  { %444 = vmatmul.mubr.f32.vlgmr.msra.gmra.mrb[2].mxu1 %v32_v22  ;;  %1325 = vmatprep.subr.bf16.mxu0 %v1324_v24  ;;  %v1344_v22 = vpack.c.bf16 %v486_v17, %v485_v16  ;;  %v470_v24 = vld [vmem:[%s2334_s4 + $0x68] sm:$0xff]  ;;  %v555_v63 = vld [vmem:[%s2334_s4 + $0x310] sm:$0xff]  ;;  %v556_v1 = vld [vmem:[%s2334_s4 + $0x318] sm:$0xff] }
  0x47   :  { %1355 = vmatpush3.bf16.msra.mxu1 %v1354_v23  ;;  %726 = vmatprep.mubr.f32.mxu1 %v452_v36  ;;  %v469_v23 = vld [vmem:[%s2334_s4 + $0x60] sm:$0xff]  ;;  %v472_v36 = vld [vmem:[%s2334_s4 + $0x78] sm:$0xff]  ;;  %v574_v5 = vld [vmem:[%s2334_s4 + $0x3a8] sm:$0xff] }
  0x48   :  { %1357 = vmatprep.subr.bf16.mxu1 %v1356_v28  ;;  %v487_v28 = vld [vmem:[%s2334_s4 + $0xf0] sm:$0xff]  ;;  %v1346_v32 = vpack.c.bf16 %v470_v24, %v469_v23  ;;  %v573_v4 = vld [vmem:[%s2334_s4 + $0x3a0] sm:$0xff]  ;;  %v454_v6 = vld [vmem:[%s2335_s3 + $0x28] sm:$0xff] }
  0x49   :  { %1327 = vmatpush3.bf16.msra.mxu0 %v1326_v35  ;;  %v1348_v34 = vpack.c.bf16 %v488_v29, %v487_v28  ;;  %v471_v35 = vld [vmem:[%s2334_s4 + $0x70] sm:$0xff]  ;;  %v525_v11 = vld [vmem:[%s2334_s4 + $0x220] sm:$0xff]  ;;  %v526_v12 = vld [vmem:[%s2334_s4 + $0x228] sm:$0xff] }
  0x4a   :  { %1329 = vmatprep.subr.bf16.mxu0 %v1328_v38  ;;  %v1380_v38 = vpack.c.bf16 %v520_v31, %v519_v30  ;;  %v1350_v44 = vpack.c.bf16 %v472_v36, %v471_v35  ;;  %v557_v13 = vld [vmem:[%s2334_s4 + $0x320] sm:$0xff]  ;;  %v558_v15 = vld [vmem:[%s2334_s4 + $0x328] sm:$0xff]  ;;  %v543_v16 = vld [vmem:[%s2334_s4 + $0x2b0] sm:$0xff] }
  0x4b   :  { %1359 = vmatpush3.bf16.msra.mxu1 %v1358_v37  ;;  %v503_v37 = vld [vmem:[%s2334_s4 + $0x170] sm:$0xff]  ;;  %v544_v17 = vld [vmem:[%s2334_s4 + $0x2b8] sm:$0xff]  ;;  %v545_v28 = vld [vmem:[%s2334_s4 + $0x2c0] sm:$0xff] }
  0x4c   :  { %1361 = vmatprep.subr.bf16.mxu1 %v1360_v42  ;;  %v569_v42 = vld [vmem:[%s2334_s4 + $0x380] sm:$0xff]  ;;  %v1382_v45 = vpack.c.bf16 %v504_v39, %v503_v37  ;;  %v575_v18 = vld [vmem:[%s2334_s4 + $0x3b0] sm:$0xff]  ;;  %v576_v19 = vld [vmem:[%s2334_s4 + $0x3b8] sm:$0xff] }
  0x4d   :  { %1331 = vmatpush3.bf16.msra.mxu0 %v1330_v48  ;;  %v522_v48 = vld [vmem:[%s2334_s4 + $0x208] sm:$0xff]  ;;  %v527_v23 = vld [vmem:[%s2334_s4 + $0x230] sm:$0xff]  ;;  %v528_v24 = vld [vmem:[%s2334_s4 + $0x238] sm:$0xff] }
  0x4e   :  { %1333 = vmatprep.subr.bf16.mxu0 %v1332_v50  ;;  %v1416_v50 = vpack.c.bf16 %v570_v43, %v569_v42  ;;  %v1386_v57 = vpack.c.bf16 %v522_v48, %v521_v47  ;;  %v559_v25 = vld [vmem:[%s2334_s4 + $0x330] sm:$0xff]  ;;  %v560_v27 = vld [vmem:[%s2334_s4 + $0x338] sm:$0xff]  ;;  %v546_v29 = vld [vmem:[%s2334_s4 + $0x2c8] sm:$0xff] }
  0x4f   :  { %1363 = vmatpush3.bf16.msra.mxu1 %v1362_v49  ;;  %v553_v49 = vld [vmem:[%s2334_s4 + $0x300] sm:$0xff]  ;;  %v578_v31 = vld [vmem:[%s2334_s4 + $0x3c8] sm:$0xff]  ;;  %v547_v40 = vld [vmem:[%s2334_s4 + $0x2d0] sm:$0xff] }
  0x50   :  { %1365 = vmatprep.subr.bf16.mxu1 %v1364_v54  ;;  %v571_v54 = vld [vmem:[%s2334_s4 + $0x390] sm:$0xff]  ;;  %v1418_v59 = vpack.c.bf16 %v554_v51, %v553_v49  ;;  %v577_v30 = vld [vmem:[%s2334_s4 + $0x3c0] sm:$0xff]  ;;  %v530_v36 = vld [vmem:[%s2334_s4 + $0x248] sm:$0xff] }
  0x51   :  { %1335 = vmatpush3.bf16.msra.mxu0 %v1334_v60  ;;  %v1388_v60 = vpack.c.bf16 %v540_v53, %v539_v52  ;;  %v1420_v0 = vpack.c.bf16 %v572_v55, %v571_v54  ;;  %v529_v35 = vld [vmem:[%s2334_s4 + $0x240] sm:$0xff]  ;;  %v562_v39 = vld [vmem:[%s2334_s4 + $0x348] sm:$0xff]  ;;  %v548_v41 = vld [vmem:[%s2334_s4 + $0x2d8] sm:$0xff] }
  0x52   :  { %1337 = vmatprep.subr.bf16.mxu0 %v1336_v62  ;;  %v524_v62 = vld [vmem:[%s2334_s4 + $0x218] sm:$0xff]  ;;  %v561_v37 = vld [vmem:[%s2334_s4 + $0x340] sm:$0xff]  ;;  %v579_v42 = vld [vmem:[%s2334_s4 + $0x3d0] sm:$0xff] }
  0x53   :  { %1367 = vmatpush3.bf16.msra.mxu1 %v1366_v61  ;;  %v523_v61 = vld [vmem:[%s2334_s4 + $0x210] sm:$0xff]  ;;  %v580_v43 = vld [vmem:[%s2334_s4 + $0x3d8] sm:$0xff]  ;;  %v549_v52 = vld [vmem:[%s2334_s4 + $0x2e0] sm:$0xff] }
  0x54   :  { %1369 = vmatprep.subr.bf16.mxu1 %v1368_v2  ;;  %v541_v2 = vld [vmem:[%s2334_s4 + $0x2a0] sm:$0xff]  ;;  %v1390_v7 = vpack.c.bf16 %v524_v62, %v523_v61  ;;  %v531_v47 = vld [vmem:[%s2334_s4 + $0x250] sm:$0xff]  ;;  %v532_v48 = vld [vmem:[%s2334_s4 + $0x258] sm:$0xff] }
  0x55   :  { %1339 = vmatpush3.bf16.msra.mxu0 %v1338_v8  ;;  %v456_v8 = vld [vmem:[%s2335_s3 + $0x38] sm:$0xff]  ;;  %v563_v49 = vld [vmem:[%s2334_s4 + $0x350] sm:$0xff]  ;;  %v550_v53 = vld [vmem:[%s2334_s4 + $0x2e8] sm:$0xff] }
  0x56   :  { %1341 = vmatprep.subr.bf16.mxu0 %v1340_v10  ;;  %v1392_v10 = vpack.c.bf16 %v542_v3, %v541_v2  ;;  %v564_v51 = vld [vmem:[%s2334_s4 + $0x358] sm:$0xff]  ;;  %v581_v54 = vld [vmem:[%s2334_s4 + $0x3e0] sm:$0xff]  ;;  %v582_v55 = vld [vmem:[%s2334_s4 + $0x3e8] sm:$0xff] }
  0x57   :  { %1371 = vmatpush3.bf16.msra.mxu1 %v1370_v9  ;;  %v1422_v9 = vpack.c.bf16 %v556_v1, %v555_v63  ;;  %v565_v61 = vld [vmem:[%s2334_s4 + $0x360] sm:$0xff]  ;;  %v1440_v62 = vpack.c.bf16 %v582_v55, %v581_v54  ;;  %v566_v63 = vld [vmem:[%s2334_s4 + $0x368] sm:$0xff]  ;;  %v552_v1 = vld [vmem:[%s2334_s4 + $0x2f8] sm:$0xff] }
  0x58   :  { %1373 = vmatprep.subr.bf16.mxu1 %v1372_v14  ;;  %v1424_v14 = vpack.c.bf16 %v574_v5, %v573_v4  ;;  %v583_v2 = vld [vmem:[%s2334_s4 + $0x3f0] sm:$0xff]  ;;  %v584_v3 = vld [vmem:[%s2334_s4 + $0x3f8] sm:$0xff]  ;;  %v1442_v5 = vpack.c.bf16 %v566_v63, %v565_v61 }
  0x59   :  { %1343 = vmatpush3.bf16.msra.mxu0 %v1342_v20  ;;  %v1394_v20 = vpack.c.bf16 %v526_v12, %v525_v11  ;;  %v568_v11 = vld [vmem:[%s2334_s4 + $0x378] sm:$0xff] }
  0x5a   :  { %1345 = vmatprep.subr.bf16.mxu0 %v1344_v22  ;;  %v1396_v22 = vpack.c.bf16 %v544_v17, %v543_v16  ;;  %v910_v17 = vld [vmem:[%s2336_s2] ss:$0 sm:$0xff] }
  0x5b   :  { %1375 = vmatpush3.bf16.msra.mxu1 %v1374_v21  ;;  %v1426_v21 = vpack.c.bf16 %v558_v15, %v557_v13  ;;  %v455_v15 = vld [vmem:[%s2335_s3 + $0x30] sm:$0xff] }
  0x5c   :  { %1377 = vmatprep.subr.bf16.mxu1 %v1376_v26  ;;  %v1428_v26 = vpack.c.bf16 %v576_v19, %v575_v18 }
  0x5d   :  { %1347 = vmatpush3.bf16.msra.mxu0 %v1346_v32  ;;  %v1398_v32 = vpack.c.bf16 %v528_v24, %v527_v23 }
  0x5e   :  { %1349 = vmatprep.subr.bf16.mxu0 %v1348_v34  ;;  %v1400_v34 = vpack.c.bf16 %v546_v29, %v545_v28 }
  0x5f   :  { %1379 = vmatpush3.bf16.msra.mxu1 %v1378_v33  ;;  %v1430_v33 = vpack.c.bf16 %v560_v27, %v559_v25 }
  0x60   :  { %1381 = vmatprep.subr.bf16.mxu1 %v1380_v38  ;;  %v1432_v38 = vpack.c.bf16 %v578_v31, %v577_v30 }
  0x61   :  { %1351 = vmatpush3.bf16.msra.mxu0 %v1350_v44  ;;  %v1402_v44 = vpack.c.bf16 %v530_v36, %v529_v35  ;;  %v911_v36 = vld [vmem:[%s2337_s5] ss:$0 sm:$0xff] }
  0x62   :  { %1385 = vmatprep.subr.bf16.mxu0 %v1384_v46  ;;  %v1404_v46 = vpack.c.bf16 %v548_v41, %v547_v40 }
  0x63   :  { %1383 = vmatpush3.bf16.msra.mxu1 %v1382_v45  ;;  %v1434_v45 = vpack.c.bf16 %v562_v39, %v561_v37 }
  0x64   :  { %1417 = vmatprep.subr.bf16.mxu1 %v1416_v50  ;;  %657 = vmatmul.mubr.f32.vlgmr.msra.gmra.mrb[4].mxu0 %v449_v56  ;;  %v1436_v50 = vpack.c.bf16 %v580_v43, %v579_v42  ;;  %v1406_v56 = vpack.c.bf16 %v532_v48, %v531_v47 }
  0x65   :  { %1387 = vmatpush3.bf16.msra.mxu0 %v1386_v57  ;;  %796 = vmatprep.mubr.f32.mxu0 %v454_v6  ;;  %v1438_v57 = vpack.c.bf16 %v564_v51, %v563_v49 }
  0x66   :  { %727 = vmatmul.mubr.f32.vlgmr.msra.gmra.mrb[4].mxu1 %v451_v58  ;;  %1389 = vmatprep.subr.bf16.mxu0 %v1388_v60  ;;  %v1408_v58 = vpack.c.bf16 %v550_v53, %v549_v52  ;;  %v534_v60 = vld [vmem:[%s2334_s4 + $0x268] sm:$0xff] }
  0x67   :  { %1419 = vmatpush3.bf16.msra.mxu1 %v1418_v59  ;;  %866 = vmatprep.mubr.f32.mxu1 %v456_v8  ;;  %v533_v59 = vld [vmem:[%s2334_s4 + $0x260] sm:$0xff]  ;;  %v536_v8 = vld [vmem:[%s2334_s4 + $0x278] sm:$0xff] }
  0x68   :  { %1421 = vmatprep.subr.bf16.mxu1 %v1420_v0  ;;  %v551_v0 = vld [vmem:[%s2334_s4 + $0x2f0] sm:$0xff]  ;;  %v1410_v4 = vpack.c.bf16 %v534_v60, %v533_v59 }
  0x69   :  { %1391 = vmatpush3.bf16.msra.mxu0 %v1390_v7  ;;  %v1412_v6 = vpack.c.bf16 %v552_v1, %v551_v0  ;;  %v535_v7 = vld [vmem:[%s2334_s4 + $0x270] sm:$0xff] }
  0x6a   :  { %1393 = vmatprep.subr.bf16.mxu0 %v1392_v10  ;;  %v567_v10 = vld [vmem:[%s2334_s4 + $0x370] sm:$0xff]  ;;  %v1414_v12 = vpack.c.bf16 %v536_v8, %v535_v7 }
  0x6b   :  { %1423 = vmatpush3.bf16.msra.mxu1 %v1422_v9  ;;  %v1444_v9 = vpack.c.bf16 %v584_v3, %v583_v2  ;;  %v1446_v13 = vpack.c.bf16 %v568_v11, %v567_v10 }
  0x6c   :  { %1425 = vmatprep.subr.bf16.mxu1 %v1424_v14  ;;  %v453_v14 = vld [vmem:[%s2335_s3 + $0x20] sm:$0xff] }
  0x6d   :  { %1395 = vmatpush3.bf16.msra.mxu0 %v1394_v20 }
  0x6e   :  { %1397 = vmatprep.subr.bf16.mxu0 %v1396_v22 }
  0x6f   :  { %1427 = vmatpush3.bf16.msra.mxu1 %v1426_v21 }
  0x70   :  { %1429 = vmatprep.subr.bf16.mxu1 %v1428_v26 }
  0x71   :  { %1399 = vmatpush3.bf16.msra.mxu0 %v1398_v32 }
  0x72   :  { %1401 = vmatprep.subr.bf16.mxu0 %v1400_v34 }
  0x73   :  { %1431 = vmatpush3.bf16.msra.mxu1 %v1430_v33 }
  0x74   :  { %1433 = vmatprep.subr.bf16.mxu1 %v1432_v38 }
  0x75   :  { %1403 = vmatpush3.bf16.msra.mxu0 %v1402_v44 }
  0x76   :  { %1405 = vmatprep.subr.bf16.mxu0 %v1404_v46 }
  0x77   :  { %1435 = vmatpush3.bf16.msra.mxu1 %v1434_v45 }
  0x78   :  { %1437 = vmatprep.subr.bf16.mxu1 %v1436_v50 }
  0x79   :  { %1407 = vmatpush3.bf16.msra.mxu0 %v1406_v56 }
  0x7a   :  { %1409 = vmatprep.subr.bf16.mxu0 %v1408_v58 }
  0x7b   :  { %1439 = vmatpush3.bf16.msra.mxu1 %v1438_v57 }
  0x7c   :  { %1441 = vmatprep.subr.bf16.mxu1 %v1440_v62 }
  0x7d   :  { %1411 = vmatpush3.bf16.msra.mxu0 %v1410_v4 }
  0x7e   :  { %1413 = vmatprep.subr.bf16.mxu0 %v1412_v6 }
  0x7f   :  { %1443 = vmatpush3.bf16.msra.mxu1 %v1442_v5 }
  0x80   :  { %1445 = vmatprep.subr.bf16.mxu1 %v1444_v9 }
  0x81   :  { %1415 = vmatpush3.bf16.msra.mxu0 %v1414_v12 }
  0x83   :  { %1447 = vmatpush3.bf16.msra.mxu1 %v1446_v13 }
  0x84   :  { %797 = vmatmul.mubr.f32.vlgmr.msra.gmra.mrb[6].mxu0 %v453_v14 }
  0x86   :  { %867 = vmatmul.mubr.f32.vlgmr.msra.gmra.mrb[6].mxu1 %v455_v15 }
  0xf7   :  { %v944_v16 = vpop.f32.mrb[0].mxu0 }
  0xf8   :  { %v945_v18 = vpop.f32.mrb[1].mxu0 }
  0xf9   :  { %v979_v19 = vpop.f32.mrb[0].mxu1  ;;  %v946_v20 = vadd.f32 %v945_v18, %v944_v16 }
  0xfa   :  { %v980_v21 = vpop.f32.mrb[1].mxu1 }
  0xfb   :  { %v981_v22 = vadd.f32 %v980_v21, %v979_v19  ;;  %v236_v23 = vadd.f32 %v946_v20, %v910_v17 }
  0xfd   :  { %v306_v24 = vadd.f32 %v981_v22, %v236_v23 }
 0x117   :  { %v1014_v25 = vpop.f32.mrb[2].mxu0 }
 0x118   :  { %v1015_v26 = vpop.f32.mrb[3].mxu0 }
 0x119   :  { %v1049_v27 = vpop.f32.mrb[2].mxu1  ;;  %v1016_v28 = vadd.f32 %v1015_v26, %v1014_v25 }
 0x11a   :  { %v1050_v29 = vpop.f32.mrb[3].mxu1 }
 0x11b   :  { %v1051_v30 = vadd.f32 %v1050_v29, %v1049_v27  ;;  %v376_v31 = vadd.f32 %v1016_v28, %v306_v24 }
 0x11d   :  { %v446_v32 = vadd.f32 %v1051_v30, %v376_v31 }
 0x11f   :  { %v872_v33 = vmul.f32 %v446_v32, %v446_v32 }
 0x121   :  { %v874_v34 = vsel %vm873_vm0, %v872_v33, 0.0 }
 0x122   :  { %875 = vadd.xlane.f32.xlu0 %v874_v34 }
 0x137   :  { %v1084_v35 = vpop.f32.mrb[4].mxu0 }
 0x138   :  { %v1085_v37 = vpop.f32.mrb[5].mxu0 }
 0x139   :  { %v1119_v38 = vpop.f32.mrb[4].mxu1  ;;  %v1086_v39 = vadd.f32 %v1085_v37, %v1084_v35 }
 0x13a   :  { %v1120_v40 = vpop.f32.mrb[5].mxu1 }
 0x13b   :  { %v1121_v41 = vadd.f32 %v1120_v40, %v1119_v38  ;;  %v659_v42 = vadd.f32 %v1086_v39, %v911_v36 }
 0x13d   :  { %v729_v43 = vadd.f32 %v1121_v41, %v659_v42 }
 0x157   :  { %v1154_v44 = vpop.f32.mrb[6].mxu0 }
 0x158   :  { %v1155_v45 = vpop.f32.mrb[7].mxu0 }
 0x159   :  { %v1189_v46 = vpop.f32.mrb[6].mxu1  ;;  %v1156_v47 = vadd.f32 %v1155_v45, %v1154_v44 }
 0x15a   :  { %v1190_v48 = vpop.f32.mrb[7].mxu1 }
 0x15b   :  { %v1191_v49 = vadd.f32 %v1190_v48, %v1189_v46  ;;  %v799_v50 = vadd.f32 %v1156_v47, %v729_v43 }
 0x15d   :  { %v869_v51 = vadd.f32 %v1191_v49, %v799_v50 }
 0x15f   :  { %v880_v52 = vmul.f32 %v869_v51, %v869_v51 }
 0x161   :  { %v881_v53 = vsel %vm873_vm0, %v880_v52, 0.0 }
 0x162   :  { %882 = vadd.xlane.f32.xlu0 %v881_v53 }
 0x1af   :  { %v876_v54 = vpop.xlane.xlu0 %875 }
 0x1b0   :  { %v877_v55 = vmax.f32 %v876_v54, 1e-24 }
 0x1b2   :  { %1448 = vrsqrt.f32 %v877_v55 }
 0x1bc   :  { %v1449_v56 = vpop.eup %1448 }
 0x1bd   :  { %v879_v57 = vmul.f32 %v1449_v56, %v446_v32 }
 0x1bf   :  { %v887_v58 = vmul.f32 14.285714, %v879_v57 }
 0x1c1   :  { %v895_v59 = vpack.c.bf16 %v887_v58, %v887_v58 }
 0x1c3   :  { %897 = vst.msk [vmem:[%s2338_s6] sm:$0xf] %vm896_vm1, %v895_v59 }
 0x1ef   :  { %v883_v60 = vpop.xlane.xlu0 %882 }
 0x1f0   :  { %v884_v61 = vmax.f32 %v883_v60, 1e-24 }
 0x1f2   :  { %1450 = vrsqrt.f32 %v884_v61 }
 0x1fc   :  { %v1451_v62 = vpop.eup %1450 }
 0x1fd   :  { %v886_v63 = vmul.f32 %v1451_v62, %v869_v51 }
 0x1ff   :  { %v888_v0 = vmul.f32 %v887_v58, %v886_v63  ;;  %894 = vst.msk [vmem:[%s2339_s7] sm:$0xff] %vm873_vm0, %v886_v63 }
 0x201   :  { %v889_v1 = vsel %vm873_vm0, %v888_v0, 0.0 }
 0x202   :  { %890 = vadd.xlane.f32.xlu1 %v889_v1 }
 0x28f   :  { %v891_v2 = vpop.xlane.xlu1 %890 }
 0x290   :  { %893 = vst.msk [vmem:[%s2340_s8] sm:$0xff] %vm892_vm2, %v891_v2 }

</bundles_post_ra>
